<compile_context>
chip_gen: v6e
topology: v6e:2x2x1
jax: 0.10.0
libtpu: 0.0.40
codegen_flags: <defaults>
</compile_context>

<pallas_src>
import functools

import jax
import jax.numpy as jnp
from jax.experimental import pallas as pl
from jax.experimental.pallas import tpu as pltpu


_LANE = 128
_MAX_ROW_TILE = 2048
_MiB = 1024 * 1024


def _round_up(x: int, m: int) -> int:
    return ((x + m - 1) // m) * m


def _cdiv(a: int, b: int) -> int:
    return -(-a // b)


def _hw_info():
    """Returns (vmem_bytes_per_tensorcore, multi_tensorcore_grid).

    Conservative fallbacks: 64 MiB VMEM (true lower bound for every
    generation) and single-TensorCore grid semantics.
    """
    vmem = 64 * _MiB
    multi_core = False
    is_v7 = False
    try:
        kind = (jax.devices()[0].device_kind or "").lower()
        is_v7 = ("v7" in kind) or ("7x" in kind)
        # Chips whose "parallel" grid axes are sharded across 2 TensorCores.
        multi_core = is_v7 or ("v4" in kind) or ("v5p" in kind)
    except Exception:  # detection is best-effort only
        pass
    try:
        reported = int(pltpu.get_tpu_info().vmem_capacity_bytes)
        if reported > 0:
            vmem = reported
    except Exception:
        pass
    if is_v7:
        vmem = min(vmem, 64 * _MiB)  # v7x: 64 MiB per TensorCore
    return vmem, multi_core


def _budgets(vmem_per_core: int):
    # Scoped VMEM limit: leave 8 MiB headroom on v7x (-> 56 MiB), cap at
    # 96 MiB on the 128 MiB chips. The explicit limit is mandatory on v5e
    # whose scoped default is only 16 MiB.
    vmem_limit = min(vmem_per_core - 8 * _MiB, 96 * _MiB)
    # Target working set (double-buffered in/out + f32 temporaries) well
    # under the limit: ~35 MiB on v7x, 48 MiB on v5e/v6e.
    tile_budget = min((vmem_limit * 5) // 8, 48 * _MiB)
    return vmem_limit, tile_budget


def _rmsnorm_kernel(x_ref, w_ref, o_ref, *, eps: float, inv_dim: float):
    # x_ref: (tile_rows, dim), w_ref: (1, dim).
    # Pass 1: sum of squares (f32 accumulation on the lane axis / XLU). Only
    # the lane-reduced (tile, 1) result needs to stay live after this.
    xf = x_ref[...].astype(jnp.float32)
    ssq = jnp.sum(xf * xf, axis=-1, keepdims=True)
    inv = jax.lax.rsqrt(ssq * inv_dim + eps)          # EUP
    scale = 1.0 + w_ref[...].astype(jnp.float32)
    # Pass 2: re-read x from the VMEM input buffer (vld slots are free in an
    # HBM-bound kernel) so a tile-sized f32 copy need not persist across the
    # reduce; multiply, scale, cast back to the input dtype.
    o_ref[...] = (x_ref[...].astype(jnp.float32) * inv * scale).astype(o_ref.dtype)


def _choose_row_tile(rows: int, dim: int, itemsize: int,
                     tile_budget: int, multi_core: bool) -> int:
    # Sublane packing of the row axis: 16 for bf16, 8 for f32, 32 for 8-bit.
    pack = max(8, 32 // max(itemsize, 1))
    # Per-element VMEM cost: double-buffered input + output (itemsize each)
    # plus ~8 B/elem headroom for f32 intermediates the compiler keeps.
    per_elem = 4 * itemsize + 8
    t = tile_budget // (per_elem * max(dim, 1))
    t = max(pack, min(_MAX_ROW_TILE, (t // pack) * pack))
    rows_p = _round_up(rows, pack)
    if t >= rows_p:
        if multi_core and rows_p >= 4 * pack:
            # v7x / megacore: >=4 grid steps -> >=2 per TensorCore so each
            # core overlaps the prefetch of its second block with the
            # compute/writeback of its first.
            t = _round_up(_cdiv(rows_p, 4), pack)
        elif multi_core and rows_p >= 2 * pack:
            t = _round_up(_cdiv(rows_p, 2), pack)
        else:
            # Single TensorCore (v5e/v6e) or tiny input: one maximal block;
            # extra grid steps would be pure ~0.35 us/step overhead.
            t = rows_p
    return t


def recurrent_gemma_rmsnorm(x: jax.Array, weight: jax.Array,
                            eps: float = 1e-6) -> jax.Array:
    """RMSNorm forward matching RecurrentGemmaRMSNorm.forward.

    x: (..., dim) any float dtype; weight: (dim,). Output dtype == x dtype.
    """
    orig_shape = x.shape
    dim = orig_shape[-1]
    rows = 1
    for s in orig_shape[:-1]:
        rows *= s
    x2d = x.reshape(rows, dim)
    w2d = weight.reshape(1, dim)

    vmem_per_core, multi_core = _hw_info()
    vmem_limit, tile_budget = _budgets(vmem_per_core)
    tile = _choose_row_tile(rows, dim, x2d.dtype.itemsize, tile_budget,
                            multi_core)
    # Ragged last block (and block > rows for tiny inputs) is handled by
    # Pallas masked block DMA: garbage rows may produce NaN through rsqrt but
    # are row-independent and their stores are masked, so results are correct.
    grid = (pl.cdiv(rows, tile),)

    out2d = pl.pallas_call(
        functools.partial(_rmsnorm_kernel, eps=float(eps), inv_dim=1.0 / dim),
        out_shape=jax.ShapeDtypeStruct((rows, dim), x.dtype),
        grid_spec=pltpu.PrefetchScalarGridSpec(
            num_scalar_prefetch=0,
            grid=grid,
            in_specs=[
                # Last block dim == full array dim: legal even when dim is
                # not a multiple of 128 (only the final lane group's store is
                # masked); avoids a separate pad/slice HBM pass.
                pl.BlockSpec((tile, dim), lambda i: (i, 0)),
                pl.BlockSpec((1, dim), lambda i: (0, 0)),  # resident weights
            ],
            out_specs=pl.BlockSpec((tile, dim), lambda i: (i, 0)),
        ),
        compiler_params=pltpu.CompilerParams(
            dimension_semantics=("parallel",),
            vmem_limit_bytes=int(vmem_limit),
        ),
    )(x2d, w2d)

    return out2d.reshape(orig_shape)


def _reference(x, weight, eps=1e-6):
    xf = x.astype(jnp.float32)
    normed = xf * jax.lax.rsqrt(jnp.mean(xf * xf, axis=-1, keepdims=True) + eps)
    out = normed * (1.0 + weight.astype(jnp.float32))
    return out.astype(x.dtype)


if __name__ == "__main__":
    key = jax.random.PRNGKey(0)
    batch, seq, hidden = 2, 8, 32
    kx, kw = jax.random.split(key)

    x = jax.random.normal(kx, (batch, seq, hidden), dtype=jnp.bfloat16)
    # nn.Parameter(torch.zeros(dim)) -> zeros; perturb slightly so the
    # (1 + weight) scale path is actually exercised.
    weight = jnp.zeros((hidden,), dtype=jnp.float32) + 0.01 * jax.random.normal(
        kw, (hidden,), dtype=jnp.float32)

    out = recurrent_gemma_rmsnorm(x, weight, eps=1e-6)
    out = jax.block_until_ready(out)

    ref = _reference(x, weight, eps=1e-6)
    assert out.dtype == x.dtype
    assert out.shape == x.shape
    assert jnp.allclose(out.astype(jnp.float32), ref.astype(jnp.float32),
                        atol=1e-2, rtol=1e-2)

    print("KERNEL_OK")
</pallas_src>

<mosaic_0001>
module attributes {stable_mosaic.version = 11 : i64} {
  func.func @_rmsnorm_kernel(%arg0: i32, %arg1: memref<16x32xbf16, #tpu.memory_space<vmem>>, %arg2: memref<1x32xf32, #tpu.memory_space<vmem>>, %arg3: memref<16x32xbf16, #tpu.memory_space<vmem>>) attributes {dimension_semantics = [#tpu.dimension_semantics<parallel>], iteration_bounds = array<i64: 1>, scalar_prefetch = 0 : i64, scratch_operands = 0 : i64, tpu.core_type = #tpu.core_type<tc>, window_params = [{transform_indices = @transform_0, window_bounds = array<i64: 16, 32>}, {pipeline_mode = #tpu.pipeline_mode<synchronous>, transform_indices = @transform_1, window_bounds = array<i64: 1, 32>}, {transform_indices = @transform_2, window_bounds = array<i64: 16, 32>}]} {
    %c0 = arith.constant 0 : index
    %c0_0 = arith.constant 0 : index
    %0 = vector.load %arg1[%c0, %c0_0] : memref<16x32xbf16, #tpu.memory_space<vmem>>, vector<16x32xbf16>
    %1 = arith.extf %0 : vector<16x32xbf16> to vector<16x32xf32>
    %2 = arith.mulf %1, %1 : vector<16x32xf32>
    %cst = arith.constant dense<0.000000e+00> : vector<16xf32>
    %3 = vector.multi_reduction <add>, %2, %cst [1] : vector<16x32xf32> to vector<16xf32>
    %4 = vector.shape_cast %3 : vector<16xf32> to vector<16x1xf32>
    %cst_1 = arith.constant 3.125000e-02 : f32
    %5 = vector.broadcast %cst_1 : f32 to vector<16x1xf32>
    %6 = arith.mulf %4, %5 : vector<16x1xf32>
    %cst_2 = arith.constant 9.99999997E-7 : f32
    %7 = vector.broadcast %cst_2 : f32 to vector<16x1xf32>
    %8 = arith.addf %6, %7 : vector<16x1xf32>
    %9 = math.rsqrt %8 : vector<16x1xf32>
    %c0_3 = arith.constant 0 : index
    %c0_4 = arith.constant 0 : index
    %10 = vector.load %arg2[%c0_3, %c0_4] : memref<1x32xf32, #tpu.memory_space<vmem>>, vector<1x32xf32>
    %cst_5 = arith.constant 1.000000e+00 : f32
    %11 = vector.broadcast %cst_5 : f32 to vector<1x32xf32>
    %12 = arith.addf %11, %10 : vector<1x32xf32>
    %c0_6 = arith.constant 0 : index
    %c0_7 = arith.constant 0 : index
    %13 = vector.load %arg1[%c0_6, %c0_7] : memref<16x32xbf16, #tpu.memory_space<vmem>>, vector<16x32xbf16>
    %14 = arith.extf %13 : vector<16x32xbf16> to vector<16x32xf32>
    %15 = vector.broadcast %9 : vector<16x1xf32> to vector<16x32xf32>
    %16 = arith.mulf %14, %15 : vector<16x32xf32>
    %17 = vector.broadcast %12 : vector<1x32xf32> to vector<16x32xf32>
    %18 = arith.mulf %16, %17 : vector<16x32xf32>
    %19 = arith.truncf %18 : vector<16x32xf32> to vector<16x32xbf16>
    %c0_8 = arith.constant 0 : index
    %c0_9 = arith.constant 0 : index
    %20 = vector.load %arg3[%c0_8, %c0_9] : memref<16x32xbf16, #tpu.memory_space<vmem>>, vector<16x32xbf16>
    tpu.vector_store %arg3[%c0_8, %c0_9], %19 {strides = array<i32>} : memref<16x32xbf16, #tpu.memory_space<vmem>>, vector<16x32xbf16>,
    return
  }
  func.func @transform_0(%arg0: i32) -> (i32, i32) {
    %c0_i32 = arith.constant 0 : i32
    %c0_i32_0 = arith.constant 0 : i32
    return %arg0, %c0_i32 : i32, i32
  }
  func.func @transform_1(%arg0: i32) -> (i32, i32) {
    %c0_i32 = arith.constant 0 : i32
    %c0_i32_0 = arith.constant 0 : i32
    %c0_i32_1 = arith.constant 0 : i32
    return %c0_i32, %c0_i32_0 : i32, i32
  }
  func.func @transform_2(%arg0: i32) -> (i32, i32) {
    %c0_i32 = arith.constant 0 : i32
    %c0_i32_0 = arith.constant 0 : i32
    return %arg0, %c0_i32 : i32, i32
  }
}

</mosaic_0001>

<bundles_post_ra>
// kernel: tpu_custom_call.1
= control target key start
LH: loop header
LB: loop body
LE: loop exit
PB: predicated region body
PF: predicated region fallthrough
CT: control target
= control target key end

     0   :  { %7 = vsyncpa [#allocation3], 0  ;;  %s179_s0 = inlined_call_operand.hbm [shape: bf16[16,32], index: 0, kind: input, shape index: {}]   ;;  %s180_s1 = inlined_call_operand.vmem [shape: f32[1,32], index: 1, kind: input, shape index: {}]   ;;  %s181_s2 = inlined_call_operand.hbm [shape: bf16[16,32], index: 2, kind: output, shape index: {}]  }
   0x1   :  { %8 = vsyncpa [#allocation4], 0  ;;  %s145_s9 = smov [#allocation2]  }
   0x2   :  { %s14_s10 = sshll.u32 %s145_s9, 4  ;;  %s15_s10 = int_to_ptr.vmem [resolvable:$true] %s14_s10 }
   0x3   :  { %s109_s11 = scalar_lea.vmem %s15_s10, 128  ;;  %p114_p1 = scmp.lt.s32.totalorder %s15_s10, %s15_s10 }
   0x4   :  { %p110_p0 = scmp.ne.s32.totalorder %s15_s10, %s109_s11  ;;  %p115_p2 = scmp.lt.s32.totalorder %s109_s11, %s109_s11 }
   0x6   :  { %p116_p3 = por %p115_p2, %p114_p1 }
   0x8   :  { %p117_p4 = pnand %p116_p3, %p110_p0 }
   0xa   :  { %120 = shalt.err (!%p117_p4)
}
   0xb   :  { %s146_s12 = smov 64   ;;  %s147_s13 = smov 4  }
   0xc   :  { %20 = dma.hbm_to_vmem [thread:$0]  %s179_s0, 128, %s15_s10, [#allocation3], %s146_s12, %s146_s12, %s147_s13  }
   0xd   :  { %141 = dma.done.wait [#allocation3], 128  }
   0xe   :  { %142 = vsyncadd [#allocation3], 4294967168  ;;  %v90_v0 = vld [vmem:[#allocation2] sm:$0xff]   ;;  %vm32_vm0 = vcmask 261120   ;;  %v50_v12 = vlaneseq  ;;  %vm65_vm1 = vcmask 257024   ;;  %s148_s17 = smov [#allocation5]  }
   0xf   :  { %v91_v1 = vunpack.c.l.bf16 %v90_v0  ;;  %v92_v2 = vunpack.c.h.bf16 %v90_v0  ;;  %v45_v15 = vld [vmem:[%s180_s1] sm:$0x1]  ;;  %s73_s18 = sshll.u32 %s148_s17, 4  ;;  %s74_s18 = int_to_ptr.vmem [resolvable:$true] %s73_s18 }
  0x10   :  { %v51_v14 = vshrl.u32 %v50_v12, 7  ;;  %v46_v16 = vadd.f32 1.0, %v45_v15  ;;  %s121_s19 = scalar_lea.vmem %s74_s18, 128  ;;  %p126_p6 = scmp.lt.s32.totalorder %s74_s18, %s74_s18 }
  0x11   :  { %v30_v3 = vmul.f32 %v91_v1, %v91_v1  ;;  %v31_v4 = vmul.f32 %v92_v2, %v92_v2  ;;  %p122_p5 = scmp.ne.s32.totalorder %s74_s18, %s121_s19  ;;  %p127_p7 = scmp.lt.s32.totalorder %s121_s19, %s121_s19 }
  0x12   :  { %v52_v17 = vsub.s32 0, %v51_v14 }
  0x13   :  { %v33_v5 = vsel %vm32_vm0, %v30_v3, 0.0  ;;  %v36_v6 = vsel %vm32_vm0, %v31_v4, 0.0  ;;  %p128_p8 = por %p127_p7, %p126_p6 }
  0x14   :  { %34 = vadd.xlane.f32.xlu0 %v33_v5  ;;  %v53_v18 = vrot.slane %v46_v16, %v52_v17 }
  0x15   :  { %p129_p9 = pnand %p128_p8, %p122_p5 }
  0x18   :  { %37 = vadd.xlane.f32.xlu0 %v36_v6 }
  0x9d   :  { %v35_v7 = vpop.xlane.xlu0 %34 }
  0x9e   :  { %v39_v8 = vmul.f32 0.03125, %v35_v7 }
  0xa0   :  { %v41_v9 = vadd.f32 1e-06, %v39_v8 }
  0xa1   :  { %v38_v10 = vpop.xlane.xlu0 %37 }
  0xa2   :  { %97 = vrsqrt.f32 %v41_v9  ;;  %v40_v11 = vmul.f32 0.03125, %v38_v10 }
  0xa4   :  { %v42_v13 = vadd.f32 1e-06, %v40_v11 }
  0xa6   :  { %99 = vrsqrt.f32 %v42_v13 }
  0xaf   :  { %v98_v19 = vpop.eup %97 }
  0xb0   :  { %v47_v20 = vmul.f32 %v98_v19, %v91_v1 }
  0xb2   :  { %v55_v21 = vmul.f32 %v53_v18, %v47_v20 }
  0xb3   :  { %v100_v22 = vpop.eup %99 }
  0xb4   :  { %v48_v23 = vmul.f32 %v100_v22, %v92_v2  ;;  %v87_v24 = vpack.c.bf16 %v55_v21, %v55_v21 }
  0xb6   :  { %v56_v25 = vmul.f32 %v53_v18, %v48_v23  ;;  %66 = vst.msk [vmem:[#allocation5] sm:$0xf] %vm65_vm1, %v87_v24 }
  0xb8   :  { %v88_v26 = vpack.c.bf16 %v56_v25, %v56_v25 }
  0xba   :  { %67 = vst.msk [vmem:[#allocation5 + $0x4] sm:$0xf] %vm65_vm1, %v88_v26 }
  0xbb   :  { %132 = shalt.err (!%p129_p9)
}
  0xbc   :  { %79 = dma.vmem_to_hbm [thread:$0]  %s74_s18, 128, %s181_s2, [#allocation4], %s146_s12, %s146_s12, %s147_s13  }
  0xbd   :  { %143 = dma.done.wait [#allocation4], 128  }
  0xbe   :  { %144 = vsyncadd [#allocation4], 4294967168 }
  0xbf   :  { %83 = vsyncpa [#allocation3], 1 }
  0xc0   :  { %84 = vsyncpa [#allocation4], 1 }

</bundles_post_ra>
